<compile_context>
chip_gen: v6e
topology: v6e:2x2x1
jax: 0.10.0
libtpu: 0.0.40
codegen_flags: <defaults>
</compile_context>

<pallas_src>
import jax
import jax.numpy as jnp
from jax.experimental import pallas as pl
from jax.experimental.pallas import tpu as pltpu

_LANES = 128


def _logreg_kernel(x_ref, w_ref, b_ref, o_ref):
    # Linear(1, 1): z = x * w + b  (w, b scalars in SMEM), then elementwise sigmoid.
    w = w_ref[0]
    b = b_ref[0]
    z = x_ref[...].astype(jnp.float32) * w + b
    o_ref[...] = jax.nn.sigmoid(z).astype(o_ref.dtype)


def logistic_regression_forward(x, weight, bias, *, tile_r=1024):
    """x: (N, 1); weight: (1, 1); bias: (1,) -> (N, 1), same dtype as x."""
    n, f = x.shape
    assert f == 1, "Linear(1, 1) expects a single input feature"
    out_dtype = x.dtype

    # --- Lane-dense reshape: (N, 1) -> flat -> (rows, 128), padding the tail. ---
    rows = max(1, (n + _LANES - 1) // _LANES)
    tile_r = min(tile_r, rows)
    rows_padded = ((rows + tile_r - 1) // tile_r) * tile_r
    padded_n = rows_padded * _LANES

    flat = x.reshape(-1)
    if padded_n != n:
        flat = jnp.pad(flat, (0, padded_n - n))
    x2d = flat.reshape(rows_padded, _LANES)

    # Scalar parameters live in SMEM (no lane padding, cheap scalar reads).
    w_flat = weight.reshape((1,)).astype(jnp.float32)
    b_flat = bias.reshape((1,)).astype(jnp.float32)

    grid = (rows_padded // tile_r,)

    out2d = pl.pallas_call(
        _logreg_kernel,
        out_shape=jax.ShapeDtypeStruct((rows_padded, _LANES), out_dtype),
        grid_spec=pl.GridSpec(
            grid=grid,
            in_specs=[
                pl.BlockSpec((tile_r, _LANES), lambda i: (i, 0)),
                pl.BlockSpec(memory_space=pltpu.SMEM),
                pl.BlockSpec(memory_space=pltpu.SMEM),
            ],
            out_specs=pl.BlockSpec((tile_r, _LANES), lambda i: (i, 0)),
        ),
        compiler_params=pltpu.CompilerParams(
            dimension_semantics=("parallel",),
        ),
    )(x2d, w_flat, b_flat)

    # Drop the padded tail and restore the (N, 1) logical shape.
    return out2d.reshape(-1)[:n].reshape(n, 1)


if __name__ == "__main__":
    key = jax.random.PRNGKey(0)
    kx, kw, kb = jax.random.split(key, 3)

    # Small batch consistent with Linear(1, 1): x has shape (N, 1).
    N = 8
    x = jax.random.normal(kx, (N, 1), dtype=jnp.float32)

    # Deterministic parameter init (mimics torch.nn.Linear uniform init for fan_in=1).
    weight = jax.random.uniform(kw, (1, 1), minval=-1.0, maxval=1.0, dtype=jnp.float32)
    bias = jax.random.uniform(kb, (1,), minval=-1.0, maxval=1.0, dtype=jnp.float32)

    y = logistic_regression_forward(x, weight, bias)
    jax.block_until_ready(y)

    # Reference check in plain JAX (f32 path).
    y_ref = jax.nn.sigmoid(x @ weight.T + bias)
    assert y.shape == (N, 1)
    assert jnp.allclose(y, y_ref, atol=1e-6, rtol=1e-6)

    # Second check: non-multiple-of-128 batch exercising the padded/tiled path,
    # plus a bf16 I/O pass (compute still in f32 inside the kernel).
    N2 = 300
    x2 = jax.random.normal(jax.random.PRNGKey(1), (N2, 1), dtype=jnp.float32)
    y2 = logistic_regression_forward(x2, weight, bias)
    jax.block_until_ready(y2)
    y2_ref = jax.nn.sigmoid(x2 @ weight.T + bias)
    assert jnp.allclose(y2, y2_ref, atol=1e-6, rtol=1e-6)

    y2_bf16 = logistic_regression_forward(x2.astype(jnp.bfloat16), weight, bias)
    jax.block_until_ready(y2_bf16)
    assert jnp.allclose(y2_bf16.astype(jnp.float32), y2_ref, atol=1e-2, rtol=1e-2)

    print("KERNEL_OK")
</pallas_src>

<mosaic_0001>
module attributes {stable_mosaic.version = 11 : i64} {
  func.func @_logreg_kernel(%arg0: i32, %arg1: memref<1x128xf32, #tpu.memory_space<vmem>>, %arg2: memref<1xf32, #tpu.memory_space<smem>>, %arg3: memref<1xf32, #tpu.memory_space<smem>>, %arg4: memref<1x128xf32, #tpu.memory_space<vmem>>) attributes {dimension_semantics = [#tpu.dimension_semantics<parallel>], iteration_bounds = array<i64: 1>, scalar_prefetch = 0 : i64, scratch_operands = 0 : i64, tpu.core_type = #tpu.core_type<tc>, window_params = [{transform_indices = @transform_0, window_bounds = array<i64: 1, 128>}, {transform_indices = @transform_1, window_bounds = array<i64: 1>}, {transform_indices = @transform_2, window_bounds = array<i64: 1>}, {transform_indices = @transform_3, window_bounds = array<i64: 1, 128>}]} {
    %c0 = arith.constant 0 : index
    %0 = memref.load %arg2[%c0] : memref<1xf32, #tpu.memory_space<smem>>
    %c0_0 = arith.constant 0 : index
    %1 = memref.load %arg3[%c0_0] : memref<1xf32, #tpu.memory_space<smem>>
    %c0_1 = arith.constant 0 : index
    %c0_2 = arith.constant 0 : index
    %2 = vector.load %arg1[%c0_1, %c0_2] : memref<1x128xf32, #tpu.memory_space<vmem>>, vector<1x128xf32>
    %3 = vector.broadcast %0 : f32 to vector<1x128xf32>
    %4 = arith.mulf %2, %3 : vector<1x128xf32>
    %5 = vector.broadcast %1 : f32 to vector<1x128xf32>
    %6 = arith.addf %4, %5 : vector<1x128xf32>
    %7 = arith.negf %6 : vector<1x128xf32>
    %8 = math.exp %7 : vector<1x128xf32>
    %cst = arith.constant 1.000000e+00 : f32
    %9 = vector.broadcast %cst : f32 to vector<1x128xf32>
    %10 = arith.addf %9, %8 : vector<1x128xf32>
    %11 = arith.divf %9, %10 : vector<1x128xf32>
    %c0_3 = arith.constant 0 : index
    %c0_4 = arith.constant 0 : index
    %12 = vector.load %arg4[%c0_3, %c0_4] : memref<1x128xf32, #tpu.memory_space<vmem>>, vector<1x128xf32>
    tpu.vector_store %arg4[%c0_3, %c0_4], %11 {strides = array<i32>} : memref<1x128xf32, #tpu.memory_space<vmem>>, vector<1x128xf32>,
    return
  }
  func.func @transform_0(%arg0: i32) -> (i32, i32) {
    %c0_i32 = arith.constant 0 : i32
    %c0_i32_0 = arith.constant 0 : i32
    return %arg0, %c0_i32 : i32, i32
  }
  func.func @transform_1(%arg0: i32) -> i32 {
    %c0_i32 = arith.constant 0 : i32
    %c0_i32_0 = arith.constant 0 : i32
    return %c0_i32 : i32
  }
  func.func @transform_2(%arg0: i32) -> i32 {
    %c0_i32 = arith.constant 0 : i32
    %c0_i32_0 = arith.constant 0 : i32
    return %c0_i32 : i32
  }
  func.func @transform_3(%arg0: i32) -> (i32, i32) {
    %c0_i32 = arith.constant 0 : i32
    %c0_i32_0 = arith.constant 0 : i32
    return %arg0, %c0_i32 : i32, i32
  }
}

</mosaic_0001>

<bundles_post_ra>
// kernel: tpu_custom_call.1
= control target key start
LH: loop header
LB: loop body
LE: loop exit
PB: predicated region body
PF: predicated region fallthrough
CT: control target
= control target key end

     0   :  { %s106_s0 = inlined_call_operand.vmem [shape: f32[1,128], index: 0, kind: input, shape index: {}]   ;;  %s107_s1 = inlined_call_operand.<no memory space> [shape: f32[1], index: 1, kind: input, shape index: {}]   ;;  %s108_s2 = inlined_call_operand.<no memory space> [shape: f32[1], index: 2, kind: input, shape index: {}]   ;;  %s109_s3 = inlined_call_operand.hbm [shape: f32[1,128], index: 3, kind: output, shape index: {}]  }
   0x1   :  { %v19_v0 = vld [vmem:[%s106_s0] sm:$0x1]  ;;  %v20_v1 = vstv %s107_s1  ;;  %v22_v2 = vstv %s108_s2 }
   0x2   :  { %10 = vsyncpa [#allocation5], 0  ;;  %v21_v3 = vmul.f32 %v20_v1, %v19_v0  ;;  %s73_s18 = smov [#allocation4]  }
   0x3   :  { %s37_s19 = sshll.u32 %s73_s18, 4  ;;  %s38_s19 = int_to_ptr.vmem [resolvable:$true] %s37_s19 }
   0x4   :  { %v23_v4 = vadd.f32 %v22_v2, %v21_v3  ;;  %s51_s0 = scalar_lea.vmem %s38_s19, 16  ;;  %s55_s1 = scalar_lea.vmem %s38_s19, 32 }
   0x5   :  { %p52_p0 = scmp.ne.s32.totalorder %s38_s19, %s51_s0  ;;  %p56_p1 = scmp.lt.s32.totalorder %s38_s19, %s38_s19 }
   0x6   :  { %v45_v5 = vmul.f32 -1.442695, %v23_v4  ;;  %p57_p2 = scmp.lt.s32.totalorder %s55_s1, %s51_s0 }
   0x8   :  { %47 = vpow2.f32 %v45_v5  ;;  %p58_p3 = por %p57_p2, %p56_p1 }
   0xa   :  { %p59_p4 = pnand %p58_p3, %p52_p0 }
  0x15   :  { %v48_v6 = vpop.eup %47 }
  0x16   :  { %v27_v7 = vadd.f32 1.0, %v48_v6 }
  0x18   :  { %49 = vrcp.f32 %v27_v7 }
  0x25   :  { %v50_v8 = vpop.eup %49 }
  0x26   :  { %30 = vst [vmem:[#allocation4] sm:$0x1] %v50_v8 }
  0x27   :  { %62 = shalt.err (!%p59_p4)
}
  0x28   :  { %40 = dma.vmem_to_hbm [thread:$0]  %s38_s19, 16, %s109_s3, [#allocation5]  }
  0x29   :  { %71 = dma.done.wait [#allocation5], 16  }
  0x2a   :  { %72 = vsyncadd [#allocation5], 4294967280 }
  0x2b   :  { %44 = vsyncpa [#allocation5], 1 }

</bundles_post_ra>
